<compile_context>
chip_gen: v7x
topology: tpu7x:2x2x1
jax: 0.10.0
libtpu: 0.0.40
codegen_flags: <defaults>
</compile_context>

<pallas_src>
import jax
import jax.numpy as jnp
from jax.experimental import pallas as pl
from jax.experimental.pallas import tpu as pltpu

_LANE = 128
_SUBLANE = 8
_VMEM_LIMIT = 32 * 1024 * 1024        # safe scoped-VMEM limit on v5e/v6e/v7x
_TILE_BUDGET = 24 * 1024 * 1024       # target bytes of per-step tile buffers


def _bias_add_kernel(x_ref, b_ref, o_ref):
    # x_ref: (row_tile, col_tile) input tile
    # b_ref: (1, col_tile) bias row (same block across the row axis -> VMEM resident)
    # o_ref: (row_tile, col_tile) output tile
    o_ref[...] = x_ref[...] + b_ref[...]  # (1, cols) broadcasts over rows


def _pick_tiles(rows: int, cols: int, itemsize: int) -> tuple[int, int]:
    """Choose (row_tile, col_tile) targeting ~_TILE_BUDGET bytes of buffers.

    Per-step VMEM ~= 2 * row_tile*col_tile (x, double-buffered)
                   + 2 * row_tile*col_tile (out, double-buffered)
                   + col_tile              (bias, resident)
    """
    # Column tiling only when lane-aligned (128-multiple blocks are legal) and
    # a minimal 8-row tile would still blow the budget; otherwise keep the
    # full width so the bias stays a single block.
    col_tile = cols
    if cols % _LANE == 0:
        max_cols = _TILE_BUDGET // (4 * _SUBLANE * itemsize)
        if cols > max_cols:
            col_tile = max(_LANE, (max_cols // _LANE) * _LANE)

    # Row tile: as many rows as the budget allows ...
    row_tile = min(rows, max(1, _TILE_BUDGET // (4 * col_tile * itemsize)))
    # ... but keep >= 4 grid steps along rows when rows is large, so v7x's two
    # TCs each get >= 2 steps (TC split + DMA/compute overlap both survive).
    if rows >= 4 * _SUBLANE:
        row_tile = min(row_tile, max(_SUBLANE, rows // 4))
    # Sublane-align any non-full row tile; a full-extent tile is always legal.
    if row_tile < rows:
        row_tile = max(_SUBLANE, (row_tile // _SUBLANE) * _SUBLANE)
    row_tile = max(1, min(row_tile, rows))
    return row_tile, col_tile


def _bias_add_2d(x2: jax.Array, b2: jax.Array) -> jax.Array:
    """x2: (rows, cols), b2: (1, cols)."""
    rows, cols = x2.shape
    row_tile, col_tile = _pick_tiles(rows, cols, jnp.dtype(x2.dtype).itemsize)
    grid = (pl.cdiv(rows, row_tile), pl.cdiv(cols, col_tile))
    return pl.pallas_call(
        _bias_add_kernel,
        out_shape=jax.ShapeDtypeStruct((rows, cols), x2.dtype),
        grid=grid,
        in_specs=[
            pl.BlockSpec((row_tile, col_tile), lambda i, j: (i, j)),
            pl.BlockSpec((1, col_tile), lambda i, j: (0, j)),  # bias: VMEM resident per column block
        ],
        out_specs=pl.BlockSpec((row_tile, col_tile), lambda i, j: (i, j)),
        compiler_params=pltpu.CompilerParams(
            # Row and column tiles are fully independent -> both "parallel";
            # lets v7x shard grid steps across its 2 TensorCores.
            dimension_semantics=("parallel", "parallel"),
            vmem_limit_bytes=_VMEM_LIMIT,
        ),
    )(x2, b2)


def bias_forward(x: jax.Array, bias: jax.Array) -> jax.Array:
    """Pallas TPU equivalent of `x + bias.expand_as(x)` for bias of shape (1, D)."""
    assert x.ndim >= 2 and bias.ndim == 2 and bias.shape[0] == 1
    D = x.shape[-1]
    assert bias.shape[1] == D

    orig_shape = x.shape
    if x.ndim > 2:
        x = x.reshape(-1, D)  # free for a contiguous array
    B = x.shape[0]

    if D % _LANE == 0:
        # Already lane-dense: unmasked full-lane stores.
        y = _bias_add_2d(x, bias)
    elif _LANE % D == 0 and (B * D) % _LANE == 0:
        # Lane-dense repack: flatten so the last dim is exactly 128 lanes
        # (metadata-only reshape).  Each 128-wide row holds 128//D logical
        # rows, so the bias simply repeats that many times along the lanes.
        reps = _LANE // D
        rows = (B * D) // _LANE
        y = _bias_add_2d(x.reshape(rows, _LANE), jnp.tile(bias, (1, reps)))
        y = y.reshape(B, D)
    else:
        # General case: full-extent last dim (legal block shape).  Stores may
        # be masked, but there are no wrapper-side pad/slice HBM passes — the
        # kernel still moves exactly one read + one write of the array.
        y = _bias_add_2d(x, bias)

    return y.reshape(orig_shape)


if __name__ == "__main__":
    # Deterministic params, mirroring nn.Parameter(torch.zeros(1, D).fill_(0.1))
    batch = 8
    out_size = 32
    initial_bias = 0.1

    bias = jnp.full((1, out_size), initial_bias, dtype=jnp.float32)
    x = jax.random.normal(jax.random.PRNGKey(0), (batch, out_size), dtype=jnp.float32)

    # Small demo shape (exercises the lane-dense repack path).
    y = jax.block_until_ready(bias_forward(x, bias))
    assert jnp.allclose(y, x + bias, atol=1e-6), "mismatch vs reference (repack)"

    # Larger lane-dense shape (exercises the multi-step, row-tiled path).
    D2 = 128
    bias2 = jnp.full((1, D2), initial_bias, dtype=jnp.float32)
    x2 = jax.random.normal(jax.random.PRNGKey(1), (2048, D2), dtype=jnp.float32)
    y2 = jax.block_until_ready(bias_forward(x2, bias2))
    assert jnp.allclose(y2, x2 + bias2, atol=1e-6), "mismatch vs reference (lane-dense)"

    # Awkward shape (D neither multiple nor divisor of 128, odd batch) —
    # exercises the pad-free full-extent path.
    D3, B3 = 48, 7
    bias3 = jnp.full((1, D3), initial_bias, dtype=jnp.float32)
    x3 = jax.random.normal(jax.random.PRNGKey(2), (B3, D3), dtype=jnp.float32)
    y3 = jax.block_until_ready(bias_forward(x3, bias3))
    assert jnp.allclose(y3, x3 + bias3, atol=1e-6), "mismatch vs reference (full-extent)"

    print("KERNEL_OK")
</pallas_src>

<mosaic_0001>
module attributes {stable_mosaic.version = 11 : i64} {
  func.func @_bias_add_kernel(%arg0: i32, %arg1: i32, %arg2: memref<2x128xf32, #tpu.memory_space<vmem>>, %arg3: memref<1x128xf32, #tpu.memory_space<vmem>>, %arg4: memref<2x128xf32, #tpu.memory_space<vmem>>) attributes {dimension_semantics = [#tpu.dimension_semantics<parallel>, #tpu.dimension_semantics<parallel>], iteration_bounds = array<i64: 1, 1>, scalar_prefetch = 0 : i64, scratch_operands = 0 : i64, tpu.core_type = #tpu.core_type<tc>, window_params = [{transform_indices = @transform_0, window_bounds = array<i64: 2, 128>}, {transform_indices = @transform_1, window_bounds = array<i64: 1, 128>}, {transform_indices = @transform_2, window_bounds = array<i64: 2, 128>}]} {
    %c0 = arith.constant 0 : index
    %c0_0 = arith.constant 0 : index
    %0 = vector.load %arg2[%c0, %c0_0] : memref<2x128xf32, #tpu.memory_space<vmem>>, vector<2x128xf32>
    %c0_1 = arith.constant 0 : index
    %c0_2 = arith.constant 0 : index
    %1 = vector.load %arg3[%c0_1, %c0_2] : memref<1x128xf32, #tpu.memory_space<vmem>>, vector<1x128xf32>
    %2 = vector.broadcast %1 : vector<1x128xf32> to vector<2x128xf32>
    %3 = arith.addf %0, %2 : vector<2x128xf32>
    %c0_3 = arith.constant 0 : index
    %c0_4 = arith.constant 0 : index
    %4 = vector.load %arg4[%c0_3, %c0_4] : memref<2x128xf32, #tpu.memory_space<vmem>>, vector<2x128xf32>
    tpu.vector_store %arg4[%c0_3, %c0_4], %3 {strides = array<i32>} : memref<2x128xf32, #tpu.memory_space<vmem>>, vector<2x128xf32>,
    return
  }
  func.func @transform_0(%arg0: i32, %arg1: i32) -> (i32, i32) {
    %c0_i32 = arith.constant 0 : i32
    return %arg0, %arg1 : i32, i32
  }
  func.func @transform_1(%arg0: i32, %arg1: i32) -> (i32, i32) {
    %c0_i32 = arith.constant 0 : i32
    %c0_i32_0 = arith.constant 0 : i32
    return %c0_i32, %arg1 : i32, i32
  }
  func.func @transform_2(%arg0: i32, %arg1: i32) -> (i32, i32) {
    %c0_i32 = arith.constant 0 : i32
    return %arg0, %arg1 : i32, i32
  }
}

</mosaic_0001>

<bundles_post_ra>
// kernel: tpu_custom_call.1
= control target key start
LH: loop header
LB: loop body
LE: loop exit
PB: predicated region body
PF: predicated region fallthrough
CT: control target
= control target key end

     0   :  { %7 = vsyncpa [#allocation3], 0  ;;  %s144_s0 = inlined_call_operand.hbm [shape: f32[2,128], index: 0, kind: input, shape index: {}]   ;;  %s145_s1 = inlined_call_operand.vmem [shape: f32[1,128], index: 1, kind: input, shape index: {}]   ;;  %s146_s2 = inlined_call_operand.hbm [shape: f32[2,128], index: 2, kind: output, shape index: {}]  }
   0x1   :  { %8 = vsyncpa [#allocation4], 0  ;;  %s100_s9 = smov [#allocation2]   ;;  %s52_s13 = scalar_lea.hbm %s144_s0, 32 }
   0x2   :  { %s15_s10 = sshll.u32 %s100_s9, 4  ;;  %p53_p0 = scmp.ne.s32.totalorder %s144_s0, %s52_s13  ;;  %s16_s10 = int_to_ptr.vmem [resolvable:$true] %s15_s10 }
   0x3   :  { %p56_p1 = scmp.lt.u32.totalorder %s52_s13, %s144_s0 }
   0x5   :  { %p58_p2 = pnand %p56_p1, %p53_p0 }
   0x7   :  { %61 = shalt.err (!%p58_p2)
}
   0x8   :  { %s62_s18 = scalar_lea.vmem %s16_s10, 32  ;;  %p67_p4 = scmp.lt.s32.totalorder %s16_s10, %s16_s10 }
   0x9   :  { %p63_p3 = scmp.ne.s32.totalorder %s16_s10, %s62_s18  ;;  %p68_p5 = scmp.lt.s32.totalorder %s62_s18, %s62_s18 }
   0xb   :  { %p69_p6 = por %p68_p5, %p67_p4 }
   0xd   :  { %p70_p7 = pnand %p69_p6, %p63_p3 }
   0xf   :  { %73 = shalt.err (!%p70_p7)
}
  0x10   :  { %18 = dma.hbm_to_vmem [thread:$0]  %s144_s0, 32, %s16_s10, [#allocation3]  }
  0x11   :  { %96 = dma.done.wait [#allocation3], 32  }
  0x12   :  { %97 = vsyncadd [#allocation3], 4294967264  ;;  %s101_s21 = smov [#allocation5]   ;;  %v24_v0 = vld [vmem:[#allocation2] sm:$0x3] }
  0x13   :  { %s40_s22 = sshll.u32 %s101_s21, 4  ;;  %v49_v1 = vld [vmem:[%s145_s1] ss:$0 sm:$0xff]  ;;  %s41_s22 = int_to_ptr.vmem [resolvable:$true] %s40_s22 }
  0x14   :  { %v32_v2 = vadd.f32 %v49_v1, %v24_v0  ;;  %s74_s25 = scalar_lea.vmem %s41_s22, 32  ;;  %p79_p9 = scmp.lt.s32.totalorder %s41_s22, %s41_s22 }
  0x15   :  { %p75_p8 = scmp.ne.s32.totalorder %s41_s22, %s74_s25  ;;  %p80_p10 = scmp.lt.s32.totalorder %s74_s25, %s74_s25 }
  0x16   :  { %33 = vst [vmem:[#allocation5] sm:$0x3] %v32_v2 }
  0x17   :  { %p81_p11 = por %p80_p10, %p79_p9 }
  0x19   :  { %p82_p12 = pnand %p81_p11, %p75_p8 }
  0x1b   :  { %85 = shalt.err (!%p82_p12)
}
  0x1c   :  { %s86_s27 = scalar_lea.hbm %s146_s2, 32 }
  0x1d   :  { %p87_p13 = scmp.ne.s32.totalorder %s146_s2, %s86_s27  ;;  %p90_p0 = scmp.lt.u32.totalorder %s86_s27, %s146_s2 }
  0x1f   :  { %p92_p1 = pnand %p90_p0, %p87_p13 }
  0x21   :  { %95 = shalt.err (!%p92_p1)
}
  0x22   :  { %43 = dma.vmem_to_hbm [thread:$0]  %s41_s22, 32, %s146_s2, [#allocation4]  }
  0x23   :  { %98 = dma.done.wait [#allocation4], 32  }
  0x24   :  { %99 = vsyncadd [#allocation4], 4294967264 }
  0x25   :  { %47 = vsyncpa [#allocation3], 1 }
  0x26   :  { %48 = vsyncpa [#allocation4], 1 }

</bundles_post_ra>
